<compile_context>
chip_gen: v6e
topology: v6e:2x2x1
jax: 0.10.0
libtpu: 0.0.40
codegen_flags: <defaults>
</compile_context>

<pallas_src>
import functools

import jax
import jax.numpy as jnp
import numpy as np
from jax import lax
from jax.experimental import pallas as pl
from jax.experimental.pallas import tpu as pltpu


def _round_up(n, m):
    return ((n + m - 1) // m) * m


def _lstm_classifier_kernel(x_ref, wih_ref, whh_ref, bias_ref, wc_ref, bc_ref,
                            out_ref, h_ref, c_ref, *,
                            n_hidden, t_chunk, b_pad, seq_len):
    """One time-chunk of the LSTM recurrence plus (last chunk) classifier.

    x_ref    : (t_chunk*b_pad, F_pad) raw inputs for this chunk (time-major).
    wih_ref  : (F_pad, 4H)  W_ih^T, gate order (i, f, o, g).
    whh_ref  : (H, 4H)      W_hh^T, gate order (i, f, o, g).
    bias_ref : (1, 4H)      b_ih + b_hh (f32), same gate order.
    wc_ref   : (H, Cp)      classifier weight^T, Cp padded to 128 lanes.
    bc_ref   : (1, Cp)      classifier bias (padded).
    out_ref  : (b_pad, Cp)  logits (written on the last chunk only).
    h_ref/c_ref : (b_pad, H) f32 VMEM scratch carrying state across chunks.
    """
    H = n_hidden
    chunk = pl.program_id(0)

    @pl.when(chunk == 0)
    def _():
        h_ref[...] = jnp.zeros_like(h_ref)
        c_ref[...] = jnp.zeros_like(c_ref)

    # Resident for this chunk's few steps.  (Re-read per step / pin in MXU
    # weight regs instead once H grows past ~64 to avoid vreg spills.)
    wih = wih_ref[...]            # (F_pad, 4H)  MXU operand dtype
    whh = whh_ref[...]            # (H, 4H)      MXU operand dtype
    bias = bias_ref[...]          # (1, 4H)      f32
    mx_dtype = whh.dtype

    # Input projection for the whole chunk: one MXU call, parallel over time,
    # off the serial h-recurrence.  f32 accumulation.
    xg = jnp.dot(x_ref[...], wih,
                 preferred_element_type=jnp.float32) + bias   # (t_chunk*B, 4H)

    h = h_ref[...]                # (B, H) f32, live in vregs within the chunk
    c = c_ref[...]

    split_act = (H % 128 == 0)          # lane-aligned activation split
    needs_mask = (seq_len % t_chunk) != 0

    for t in range(t_chunk):            # static, small -> bounded unroll
        g_x = xg[t * b_pad:(t + 1) * b_pad, :]                       # (B, 4H)
        gates = g_x + jnp.dot(h.astype(mx_dtype), whh,
                              preferred_element_type=jnp.float32)    # (B, 4H)
        if split_act:
            sig = jax.nn.sigmoid(gates[:, :3 * H])    # i, f, o in one EUP pass
            i_g = sig[:, 0 * H:1 * H]
            f_g = sig[:, 1 * H:2 * H]
            o_g = sig[:, 2 * H:3 * H]
            g_g = jnp.tanh(gates[:, 3 * H:4 * H])
        else:
            sig = jax.nn.sigmoid(gates)
            tnh = jnp.tanh(gates)
            i_g = sig[:, 0 * H:1 * H]
            f_g = sig[:, 1 * H:2 * H]
            o_g = sig[:, 2 * H:3 * H]
            g_g = tnh[:, 3 * H:4 * H]
        c_new = f_g * c + i_g * g_g
        h_new = o_g * jnp.tanh(c_new)
        if needs_mask:
            # Mask padded timesteps (only the last chunk can overrun seq_len).
            m = ((chunk * t_chunk + t) < seq_len).astype(jnp.float32)
            h = m * h_new + (1.0 - m) * h
            c = m * c_new + (1.0 - m) * c
        else:
            h, c = h_new, c_new

    h_ref[...] = h
    c_ref[...] = c

    # Classifier epilogue: once per sequence, lane-dense (Cp = k*128) store.
    @pl.when(chunk == pl.num_programs(0) - 1)
    def _():
        out_ref[...] = (jnp.dot(h, wc_ref[...],
                                preferred_element_type=jnp.float32)
                        + bc_ref[...]).astype(out_ref.dtype)


def prepare_params(w_ih, w_hh, b_ih, b_hh, w_cls, b_cls, *,
                   storage_dtype=jnp.float32):
    """One-time parameter prep.

    * Permutes gates from PyTorch order (i, f, g, o) to (i, f, o, g).
    * Transposes weights for row-major MXU feeds; fuses b_ih + b_hh.
    * Pads W_ih^T's contraction dim to a multiple of 8 and the classifier
      output dim to a multiple of 128 (lane-dense store).
    * storage_dtype=jnp.bfloat16 halves VMEM/DMA for the MXU operands on
      v6e/v7x; keep f32 on v5e (no bf16 VPU/EUP) and for tight-tolerance tests.
    """
    H = w_hh.shape[1]
    F = w_ih.shape[1]
    C = w_cls.shape[0]
    F_pad = _round_up(max(F, 8), 8)
    Cp = _round_up(max(C, 128), 128)

    perm = np.concatenate([np.arange(0 * H, 1 * H),    # i
                           np.arange(1 * H, 2 * H),    # f
                           np.arange(3 * H, 4 * H),    # o
                           np.arange(2 * H, 3 * H)])   # g
    w_ih_p = w_ih[perm]
    w_hh_p = w_hh[perm]
    bias_p = (b_ih + b_hh)[perm]

    wih_t = jnp.zeros((F_pad, 4 * H), storage_dtype)
    wih_t = wih_t.at[:F, :].set(jnp.transpose(w_ih_p).astype(storage_dtype))
    whh_t = jnp.transpose(w_hh_p).astype(storage_dtype)            # (H, 4H)
    bias = bias_p.reshape(1, 4 * H).astype(jnp.float32)            # (1, 4H)
    wc_t = jnp.zeros((H, Cp), jnp.float32).at[:, :C].set(
        jnp.transpose(w_cls).astype(jnp.float32))
    bc = jnp.zeros((1, Cp), jnp.float32).at[0, :C].set(
        b_cls.astype(jnp.float32))
    return wih_t, whh_t, bias, wc_t, bc


def _vmem_limit_bytes(t_chunk, b_pad, f_pad, h, cp, mxu_itemsize):
    x_chunk = 2 * t_chunk * b_pad * f_pad * mxu_itemsize          # double-buffered
    weights = (f_pad * 4 * h + h * 4 * h) * mxu_itemsize \
        + (4 * h + h * cp + cp) * 4
    out = 2 * b_pad * cp * 4
    scratch = 2 * b_pad * h * 4
    working = (t_chunk * b_pad * 4 * h + 8 * b_pad * 4 * h) * 4   # xg + gate temps
    total = x_chunk + weights + out + scratch + working
    return int(min(max(4 * total, 8 << 20), 100 << 20))           # headroom, capped


@functools.partial(jax.jit, static_argnames=("n_classes", "t_chunk"))
def surface_model_forward(x, wih_t, whh_t, bias, wc_t, bc, *,
                          n_classes, t_chunk=16):
    """x: (B, T, F) float32 (batch_first, like the PyTorch module).
    Returns logits (B, n_classes)."""
    B, T, F = x.shape
    H = whh_t.shape[0]
    F_pad = wih_t.shape[0]
    Cp = wc_t.shape[1]
    B_pad = _round_up(max(B, 8), 8)

    t_chunk = min(t_chunk, T)
    n_chunks = pl.cdiv(T, t_chunk)
    T_pad = n_chunks * t_chunk

    # Time-major, padded, flattened so each chunk is a sublane-aligned 2-D tile.
    x_tm = jnp.transpose(x, (1, 0, 2))                            # (T, B, F)
    x_tm = jnp.pad(x_tm, ((0, T_pad - T), (0, B_pad - B), (0, F_pad - F)))
    x2 = x_tm.reshape(T_pad * B_pad, F_pad).astype(wih_t.dtype)

    kernel = functools.partial(_lstm_classifier_kernel,
                               n_hidden=H, t_chunk=t_chunk,
                               b_pad=B_pad, seq_len=T)

    vmem_limit = _vmem_limit_bytes(t_chunk, B_pad, F_pad, H, Cp,
                                   jnp.dtype(wih_t.dtype).itemsize)

    out_pad = pl.pallas_call(
        kernel,
        out_shape=jax.ShapeDtypeStruct((B_pad, Cp), jnp.float32),
        grid_spec=pltpu.PrefetchScalarGridSpec(
            num_scalar_prefetch=0,
            grid=(n_chunks,),
            in_specs=[
                pl.BlockSpec((t_chunk * B_pad, F_pad), lambda i: (i, 0)),  # x chunk
                pl.BlockSpec((F_pad, 4 * H), lambda i: (0, 0)),            # W_ih^T
                pl.BlockSpec((H, 4 * H), lambda i: (0, 0)),                # W_hh^T
                pl.BlockSpec((1, 4 * H), lambda i: (0, 0)),                # fused bias
                pl.BlockSpec((H, Cp), lambda i: (0, 0)),                   # W_cls^T
                pl.BlockSpec((1, Cp), lambda i: (0, 0)),                   # b_cls
            ],
            out_specs=pl.BlockSpec((B_pad, Cp), lambda i: (0, 0)),
            scratch_shapes=[pltpu.VMEM((B_pad, H), jnp.float32),   # h carry
                            pltpu.VMEM((B_pad, H), jnp.float32)],  # c carry
        ),
        compiler_params=pltpu.CompilerParams(
            dimension_semantics=("arbitrary",),      # serial recurrence over chunks
            vmem_limit_bytes=vmem_limit),
    )(x2, wih_t, whh_t, bias, wc_t, bc)

    return out_pad[:B, :n_classes]


def surface_model_reference(x, w_ih, w_hh, b_ih, b_hh, w_cls, b_cls):
    """Pure-JAX reference matching torch.nn.LSTM semantics (gate order i,f,g,o)."""
    B, T, F = x.shape
    H = w_hh.shape[1]

    def step(carry, x_t):
        h, c = carry
        gates = x_t @ w_ih.T + b_ih + h @ w_hh.T + b_hh
        i = jax.nn.sigmoid(gates[:, 0 * H:1 * H])
        f = jax.nn.sigmoid(gates[:, 1 * H:2 * H])
        g = jnp.tanh(gates[:, 2 * H:3 * H])
        o = jax.nn.sigmoid(gates[:, 3 * H:4 * H])
        c = f * c + i * g
        h = o * jnp.tanh(c)
        return (h, c), None

    h0 = jnp.zeros((B, H), jnp.float32)
    c0 = jnp.zeros((B, H), jnp.float32)
    (h, _), _ = lax.scan(step, (h0, c0), jnp.transpose(x, (1, 0, 2)))
    return h @ w_cls.T + b_cls


if __name__ == "__main__":
    # Small shapes consistent with the module's forward.
    B, T, F = 2, 8, 4          # batch, seq, n_features
    H, C = 32, 8               # n_hidden, n_classes

    key = jax.random.PRNGKey(0)
    ks = jax.random.split(key, 8)
    bound = 1.0 / np.sqrt(H)   # PyTorch default init range

    x = jax.random.normal(ks[0], (B, T, F), jnp.float32)
    w_ih = jax.random.uniform(ks[1], (4 * H, F), jnp.float32, -bound, bound)
    w_hh = jax.random.uniform(ks[2], (4 * H, H), jnp.float32, -bound, bound)
    b_ih = jax.random.uniform(ks[3], (4 * H,), jnp.float32, -bound, bound)
    b_hh = jax.random.uniform(ks[4], (4 * H,), jnp.float32, -bound, bound)
    w_cls = jax.random.uniform(ks[5], (C, H), jnp.float32, -bound, bound)
    b_cls = jax.random.uniform(ks[6], (C,), jnp.float32, -bound, bound)

    params = prepare_params(w_ih, w_hh, b_ih, b_hh, w_cls, b_cls)
    ref = surface_model_reference(x, w_ih, w_hh, b_ih, b_hh, w_cls, b_cls)

    # Multi-chunk grid with a ragged tail (T=8, t_chunk=3 -> 3 chunks, masking).
    out = surface_model_forward(x, *params, n_classes=C, t_chunk=3)
    out = jax.block_until_ready(out)
    np.testing.assert_allclose(np.asarray(out), np.asarray(ref),
                               rtol=1e-5, atol=1e-5)

    # Single-chunk grid (whole sequence in one chunk) for the epilogue guard.
    out1 = surface_model_forward(x, *params, n_classes=C, t_chunk=8)
    out1 = jax.block_until_ready(out1)
    np.testing.assert_allclose(np.asarray(out1), np.asarray(ref),
                               rtol=1e-5, atol=1e-5)

    print("KERNEL_OK")
</pallas_src>

<mosaic_0001>
module attributes {stable_mosaic.version = 11 : i64} {
  func.func @_lstm_classifier_kernel(%arg0: i32, %arg1: memref<24x8xf32, #tpu.memory_space<vmem>>, %arg2: memref<8x128xf32, #tpu.memory_space<vmem>>, %arg3: memref<32x128xf32, #tpu.memory_space<vmem>>, %arg4: memref<1x128xf32, #tpu.memory_space<vmem>>, %arg5: memref<32x128xf32, #tpu.memory_space<vmem>>, %arg6: memref<1x128xf32, #tpu.memory_space<vmem>>, %arg7: memref<8x128xf32, #tpu.memory_space<vmem>>, %arg8: memref<8x32xf32, #tpu.memory_space<vmem>>, %arg9: memref<8x32xf32, #tpu.memory_space<vmem>>) attributes {dimension_semantics = [#tpu.dimension_semantics<arbitrary>], iteration_bounds = array<i64: 3>, scalar_prefetch = 0 : i64, scratch_operands = 2 : i64, tpu.core_type = #tpu.core_type<tc>, window_params = [{transform_indices = @transform_0, window_bounds = array<i64: 24, 8>}, {pipeline_mode = #tpu.pipeline_mode<synchronous>, transform_indices = @transform_1, window_bounds = array<i64: 8, 128>}, {pipeline_mode = #tpu.pipeline_mode<synchronous>, transform_indices = @transform_2, window_bounds = array<i64: 32, 128>}, {pipeline_mode = #tpu.pipeline_mode<synchronous>, transform_indices = @transform_3, window_bounds = array<i64: 1, 128>}, {pipeline_mode = #tpu.pipeline_mode<synchronous>, transform_indices = @transform_4, window_bounds = array<i64: 32, 128>}, {pipeline_mode = #tpu.pipeline_mode<synchronous>, transform_indices = @transform_5, window_bounds = array<i64: 1, 128>}, {pipeline_mode = #tpu.pipeline_mode<synchronous>, transform_indices = @transform_6, window_bounds = array<i64: 8, 128>}]} {
    %c0_i32 = arith.constant 0 : i32
    %0 = arith.cmpi eq, %arg0, %c0_i32 : i32
    %1 = arith.extui %0 : i1 to i32
    %c0_i32_0 = arith.constant 0 : i32
    %2 = arith.cmpi ne, %1, %c0_i32_0 : i32
    scf.if %2 {
      %cst_35 = arith.constant 0.000000e+00 : f32
      %122 = vector.broadcast %cst_35 : f32 to vector<8x32xf32>
      %c0_36 = arith.constant 0 : index
      %c0_37 = arith.constant 0 : index
      %123 = vector.load %arg8[%c0_36, %c0_37] : memref<8x32xf32, #tpu.memory_space<vmem>>, vector<8x32xf32>
      tpu.vector_store %arg8[%c0_36, %c0_37], %122 {strides = array<i32>} : memref<8x32xf32, #tpu.memory_space<vmem>>, vector<8x32xf32>,
      %cst_38 = arith.constant 0.000000e+00 : f32
      %124 = vector.broadcast %cst_38 : f32 to vector<8x32xf32>
      %c0_39 = arith.constant 0 : index
      %c0_40 = arith.constant 0 : index
      %125 = vector.load %arg9[%c0_39, %c0_40] : memref<8x32xf32, #tpu.memory_space<vmem>>, vector<8x32xf32>
      tpu.vector_store %arg9[%c0_39, %c0_40], %124 {strides = array<i32>} : memref<8x32xf32, #tpu.memory_space<vmem>>, vector<8x32xf32>,
    } else {
    }
    %c0 = arith.constant 0 : index
    %c0_1 = arith.constant 0 : index
    %3 = vector.load %arg2[%c0, %c0_1] : memref<8x128xf32, #tpu.memory_space<vmem>>, vector<8x128xf32>
    %c0_2 = arith.constant 0 : index
    %c0_3 = arith.constant 0 : index
    %4 = vector.load %arg3[%c0_2, %c0_3] : memref<32x128xf32, #tpu.memory_space<vmem>>, vector<32x128xf32>
    %c0_4 = arith.constant 0 : index
    %c0_5 = arith.constant 0 : index
    %5 = vector.load %arg4[%c0_4, %c0_5] : memref<1x128xf32, #tpu.memory_space<vmem>>, vector<1x128xf32>
    %c0_6 = arith.constant 0 : index
    %c0_7 = arith.constant 0 : index
    %6 = vector.load %arg1[%c0_6, %c0_7] : memref<24x8xf32, #tpu.memory_space<vmem>>, vector<24x8xf32>
    %cst = arith.constant dense<0.000000e+00> : vector<24x128xf32>
    %7 = tpu.matmul %6, %3, %cst {dimension_numbers = #tpu.dot_dimension_numbers<[1], [0], [0], [1], [0, 0, 1, 1], [], []>} : vector<24x8xf32>, vector<8x128xf32>, vector<24x128xf32> -> vector<24x128xf32>
    %8 = vector.broadcast %5 : vector<1x128xf32> to vector<24x128xf32>
    %9 = arith.addf %7, %8 : vector<24x128xf32>
    %c0_8 = arith.constant 0 : index
    %c0_9 = arith.constant 0 : index
    %10 = vector.load %arg8[%c0_8, %c0_9] : memref<8x32xf32, #tpu.memory_space<vmem>>, vector<8x32xf32>
    %c0_10 = arith.constant 0 : index
    %c0_11 = arith.constant 0 : index
    %11 = vector.load %arg9[%c0_10, %c0_11] : memref<8x32xf32, #tpu.memory_space<vmem>>, vector<8x32xf32>
    %12 = vector.extract_strided_slice %9 {offsets = [0, 0], sizes = [8, 128], strides = [1, 1]} : vector<24x128xf32> to vector<8x128xf32>
    %cst_12 = arith.constant dense<0.000000e+00> : vector<8x128xf32>
    %13 = tpu.matmul %10, %4, %cst_12 {dimension_numbers = #tpu.dot_dimension_numbers<[1], [0], [0], [1], [0, 0, 1, 1], [], []>} : vector<8x32xf32>, vector<32x128xf32>, vector<8x128xf32> -> vector<8x128xf32>
    %14 = arith.addf %12, %13 : vector<8x128xf32>
    %15 = arith.negf %14 : vector<8x128xf32>
    %16 = math.exp %15 : vector<8x128xf32>
    %cst_13 = arith.constant 1.000000e+00 : f32
    %17 = vector.broadcast %cst_13 : f32 to vector<8x128xf32>
    %18 = arith.addf %17, %16 : vector<8x128xf32>
    %19 = arith.divf %17, %18 : vector<8x128xf32>
    %20 = math.tanh %14 : vector<8x128xf32>
    %21 = vector.extract_strided_slice %19 {offsets = [0, 0], sizes = [8, 32], strides = [1, 1]} : vector<8x128xf32> to vector<8x32xf32>
    %22 = vector.extract_strided_slice %19 {offsets = [0, 32], sizes = [8, 32], strides = [1, 1]} : vector<8x128xf32> to vector<8x32xf32>
    %23 = vector.extract_strided_slice %19 {offsets = [0, 64], sizes = [8, 32], strides = [1, 1]} : vector<8x128xf32> to vector<8x32xf32>
    %24 = vector.extract_strided_slice %20 {offsets = [0, 96], sizes = [8, 32], strides = [1, 1]} : vector<8x128xf32> to vector<8x32xf32>
    %25 = arith.mulf %22, %11 : vector<8x32xf32>
    %26 = arith.mulf %21, %24 : vector<8x32xf32>
    %27 = arith.addf %25, %26 : vector<8x32xf32>
    %28 = math.tanh %27 : vector<8x32xf32>
    %29 = arith.mulf %23, %28 : vector<8x32xf32>
    %c3_i32 = arith.constant 3 : i32
    %30 = arith.muli %arg0, %c3_i32 : i32
    %c0_i32_14 = arith.constant 0 : i32
    %31 = arith.addi %30, %c0_i32_14 : i32
    %c8_i32 = arith.constant 8 : i32
    %32 = arith.cmpi slt, %31, %c8_i32 : i32
    %33 = arith.extui %32 : i1 to i32
    %34 = arith.sitofp %33 : i32 to f32
    %35 = vector.broadcast %34 : f32 to vector<8x32xf32>
    %36 = arith.mulf %35, %29 : vector<8x32xf32>
    %cst_15 = arith.constant 1.000000e+00 : f32
    %37 = arith.subf %cst_15, %34 : f32
    %38 = vector.broadcast %37 : f32 to vector<8x32xf32>
    %39 = arith.mulf %38, %10 : vector<8x32xf32>
    %40 = arith.addf %36, %39 : vector<8x32xf32>
    %41 = vector.broadcast %34 : f32 to vector<8x32xf32>
    %42 = arith.mulf %41, %27 : vector<8x32xf32>
    %cst_16 = arith.constant 1.000000e+00 : f32
    %43 = arith.subf %cst_16, %34 : f32
    %44 = vector.broadcast %43 : f32 to vector<8x32xf32>
    %45 = arith.mulf %44, %11 : vector<8x32xf32>
    %46 = arith.addf %42, %45 : vector<8x32xf32>
    %47 = vector.extract_strided_slice %9 {offsets = [8, 0], sizes = [8, 128], strides = [1, 1]} : vector<24x128xf32> to vector<8x128xf32>
    %cst_17 = arith.constant dense<0.000000e+00> : vector<8x128xf32>
    %48 = tpu.matmul %40, %4, %cst_17 {dimension_numbers = #tpu.dot_dimension_numbers<[1], [0], [0], [1], [0, 0, 1, 1], [], []>} : vector<8x32xf32>, vector<32x128xf32>, vector<8x128xf32> -> vector<8x128xf32>
    %49 = arith.addf %47, %48 : vector<8x128xf32>
    %50 = arith.negf %49 : vector<8x128xf32>
    %51 = math.exp %50 : vector<8x128xf32>
    %cst_18 = arith.constant 1.000000e+00 : f32
    %52 = vector.broadcast %cst_18 : f32 to vector<8x128xf32>
    %53 = arith.addf %52, %51 : vector<8x128xf32>
    %54 = arith.divf %52, %53 : vector<8x128xf32>
    %55 = math.tanh %49 : vector<8x128xf32>
    %56 = vector.extract_strided_slice %54 {offsets = [0, 0], sizes = [8, 32], strides = [1, 1]} : vector<8x128xf32> to vector<8x32xf32>
    %57 = vector.extract_strided_slice %54 {offsets = [0, 32], sizes = [8, 32], strides = [1, 1]} : vector<8x128xf32> to vector<8x32xf32>
    %58 = vector.extract_strided_slice %54 {offsets = [0, 64], sizes = [8, 32], strides = [1, 1]} : vector<8x128xf32> to vector<8x32xf32>
    %59 = vector.extract_strided_slice %55 {offsets = [0, 96], sizes = [8, 32], strides = [1, 1]} : vector<8x128xf32> to vector<8x32xf32>
    %60 = arith.mulf %57, %46 : vector<8x32xf32>
    %61 = arith.mulf %56, %59 : vector<8x32xf32>
    %62 = arith.addf %60, %61 : vector<8x32xf32>
    %63 = math.tanh %62 : vector<8x32xf32>
    %64 = arith.mulf %58, %63 : vector<8x32xf32>
    %c3_i32_19 = arith.constant 3 : i32
    %65 = arith.muli %arg0, %c3_i32_19 : i32
    %c1_i32 = arith.constant 1 : i32
    %66 = arith.addi %65, %c1_i32 : i32
    %c8_i32_20 = arith.constant 8 : i32
    %67 = arith.cmpi slt, %66, %c8_i32_20 : i32
    %68 = arith.extui %67 : i1 to i32
    %69 = arith.sitofp %68 : i32 to f32
    %70 = vector.broadcast %69 : f32 to vector<8x32xf32>
    %71 = arith.mulf %70, %64 : vector<8x32xf32>
    %cst_21 = arith.constant 1.000000e+00 : f32
    %72 = arith.subf %cst_21, %69 : f32
    %73 = vector.broadcast %72 : f32 to vector<8x32xf32>
    %74 = arith.mulf %73, %40 : vector<8x32xf32>
    %75 = arith.addf %71, %74 : vector<8x32xf32>
    %76 = vector.broadcast %69 : f32 to vector<8x32xf32>
    %77 = arith.mulf %76, %62 : vector<8x32xf32>
    %cst_22 = arith.constant 1.000000e+00 : f32
    %78 = arith.subf %cst_22, %69 : f32
    %79 = vector.broadcast %78 : f32 to vector<8x32xf32>
    %80 = arith.mulf %79, %46 : vector<8x32xf32>
    %81 = arith.addf %77, %80 : vector<8x32xf32>
    %82 = vector.extract_strided_slice %9 {offsets = [16, 0], sizes = [8, 128], strides = [1, 1]} : vector<24x128xf32> to vector<8x128xf32>
    %cst_23 = arith.constant dense<0.000000e+00> : vector<8x128xf32>
    %83 = tpu.matmul %75, %4, %cst_23 {dimension_numbers = #tpu.dot_dimension_numbers<[1], [0], [0], [1], [0, 0, 1, 1], [], []>} : vector<8x32xf32>, vector<32x128xf32>, vector<8x128xf32> -> vector<8x128xf32>
    %84 = arith.addf %82, %83 : vector<8x128xf32>
    %85 = arith.negf %84 : vector<8x128xf32>
    %86 = math.exp %85 : vector<8x128xf32>
    %cst_24 = arith.constant 1.000000e+00 : f32
    %87 = vector.broadcast %cst_24 : f32 to vector<8x128xf32>
    %88 = arith.addf %87, %86 : vector<8x128xf32>
    %89 = arith.divf %87, %88 : vector<8x128xf32>
    %90 = math.tanh %84 : vector<8x128xf32>
    %91 = vector.extract_strided_slice %89 {offsets = [0, 0], sizes = [8, 32], strides = [1, 1]} : vector<8x128xf32> to vector<8x32xf32>
    %92 = vector.extract_strided_slice %89 {offsets = [0, 32], sizes = [8, 32], strides = [1, 1]} : vector<8x128xf32> to vector<8x32xf32>
    %93 = vector.extract_strided_slice %89 {offsets = [0, 64], sizes = [8, 32], strides = [1, 1]} : vector<8x128xf32> to vector<8x32xf32>
    %94 = vector.extract_strided_slice %90 {offsets = [0, 96], sizes = [8, 32], strides = [1, 1]} : vector<8x128xf32> to vector<8x32xf32>
    %95 = arith.mulf %92, %81 : vector<8x32xf32>
    %96 = arith.mulf %91, %94 : vector<8x32xf32>
    %97 = arith.addf %95, %96 : vector<8x32xf32>
    %98 = math.tanh %97 : vector<8x32xf32>
    %99 = arith.mulf %93, %98 : vector<8x32xf32>
    %c3_i32_25 = arith.constant 3 : i32
    %100 = arith.muli %arg0, %c3_i32_25 : i32
    %c2_i32 = arith.constant 2 : i32
    %101 = arith.addi %100, %c2_i32 : i32
    %c8_i32_26 = arith.constant 8 : i32
    %102 = arith.cmpi slt, %101, %c8_i32_26 : i32
    %103 = arith.extui %102 : i1 to i32
    %104 = arith.sitofp %103 : i32 to f32
    %105 = vector.broadcast %104 : f32 to vector<8x32xf32>
    %106 = arith.mulf %105, %99 : vector<8x32xf32>
    %cst_27 = arith.constant 1.000000e+00 : f32
    %107 = arith.subf %cst_27, %104 : f32
    %108 = vector.broadcast %107 : f32 to vector<8x32xf32>
    %109 = arith.mulf %108, %75 : vector<8x32xf32>
    %110 = arith.addf %106, %109 : vector<8x32xf32>
    %111 = vector.broadcast %104 : f32 to vector<8x32xf32>
    %112 = arith.mulf %111, %97 : vector<8x32xf32>
    %cst_28 = arith.constant 1.000000e+00 : f32
    %113 = arith.subf %cst_28, %104 : f32
    %114 = vector.broadcast %113 : f32 to vector<8x32xf32>
    %115 = arith.mulf %114, %81 : vector<8x32xf32>
    %116 = arith.addf %112, %115 : vector<8x32xf32>
    %c0_29 = arith.constant 0 : index
    %c0_30 = arith.constant 0 : index
    %117 = vector.load %arg8[%c0_29, %c0_30] : memref<8x32xf32, #tpu.memory_space<vmem>>, vector<8x32xf32>
    tpu.vector_store %arg8[%c0_29, %c0_30], %110 {strides = array<i32>} : memref<8x32xf32, #tpu.memory_space<vmem>>, vector<8x32xf32>,
    %c0_31 = arith.constant 0 : index
    %c0_32 = arith.constant 0 : index
    %118 = vector.load %arg9[%c0_31, %c0_32] : memref<8x32xf32, #tpu.memory_space<vmem>>, vector<8x32xf32>
    tpu.vector_store %arg9[%c0_31, %c0_32], %116 {strides = array<i32>} : memref<8x32xf32, #tpu.memory_space<vmem>>, vector<8x32xf32>,
    %c2_i32_33 = arith.constant 2 : i32
    %119 = arith.cmpi eq, %arg0, %c2_i32_33 : i32
    %120 = arith.extui %119 : i1 to i32
    %c0_i32_34 = arith.constant 0 : i32
    %121 = arith.cmpi ne, %120, %c0_i32_34 : i32
    scf.if %121 {
      %c0_35 = arith.constant 0 : index
      %c0_36 = arith.constant 0 : index
      %122 = vector.load %arg5[%c0_35, %c0_36] : memref<32x128xf32, #tpu.memory_space<vmem>>, vector<32x128xf32>
      %cst_37 = arith.constant dense<0.000000e+00> : vector<8x128xf32>
      %123 = tpu.matmul %110, %122, %cst_37 {dimension_numbers = #tpu.dot_dimension_numbers<[1], [0], [0], [1], [0, 0, 1, 1], [], []>} : vector<8x32xf32>, vector<32x128xf32>, vector<8x128xf32> -> vector<8x128xf32>
      %c0_38 = arith.constant 0 : index
      %c0_39 = arith.constant 0 : index
      %124 = vector.load %arg6[%c0_38, %c0_39] : memref<1x128xf32, #tpu.memory_space<vmem>>, vector<1x128xf32>
      %125 = vector.broadcast %124 : vector<1x128xf32> to vector<8x128xf32>
      %126 = arith.addf %123, %125 : vector<8x128xf32>
      %c0_40 = arith.constant 0 : index
      %c0_41 = arith.constant 0 : index
      %127 = vector.load %arg7[%c0_40, %c0_41] : memref<8x128xf32, #tpu.memory_space<vmem>>, vector<8x128xf32>
      tpu.vector_store %arg7[%c0_40, %c0_41], %126 {strides = array<i32>} : memref<8x128xf32, #tpu.memory_space<vmem>>, vector<8x128xf32>,
    } else {
    }
    return
  }
  func.func @transform_0(%arg0: i32) -> (i32, i32) {
    %c0_i32 = arith.constant 0 : i32
    %c0_i32_0 = arith.constant 0 : i32
    return %arg0, %c0_i32 : i32, i32
  }
  func.func @transform_1(%arg0: i32) -> (i32, i32) {
    %c0_i32 = arith.constant 0 : i32
    %c0_i32_0 = arith.constant 0 : i32
    %c0_i32_1 = arith.constant 0 : i32
    return %c0_i32, %c0_i32_0 : i32, i32
  }
  func.func @transform_2(%arg0: i32) -> (i32, i32) {
    %c0_i32 = arith.constant 0 : i32
    %c0_i32_0 = arith.constant 0 : i32
    %c0_i32_1 = arith.constant 0 : i32
    return %c0_i32, %c0_i32_0 : i32, i32
  }
  func.func @transform_3(%arg0: i32) -> (i32, i32) {
    %c0_i32 = arith.constant 0 : i32
    %c0_i32_0 = arith.constant 0 : i32
    %c0_i32_1 = arith.constant 0 : i32
    return %c0_i32, %c0_i32_0 : i32, i32
  }
  func.func @transform_4(%arg0: i32) -> (i32, i32) {
    %c0_i32 = arith.constant 0 : i32
    %c0_i32_0 = arith.constant 0 : i32
    %c0_i32_1 = arith.constant 0 : i32
    return %c0_i32, %c0_i32_0 : i32, i32
  }
  func.func @transform_5(%arg0: i32) -> (i32, i32) {
    %c0_i32 = arith.constant 0 : i32
    %c0_i32_0 = arith.constant 0 : i32
    %c0_i32_1 = arith.constant 0 : i32
    return %c0_i32, %c0_i32_0 : i32, i32
  }
  func.func @transform_6(%arg0: i32) -> (i32, i32) {
    %c0_i32 = arith.constant 0 : i32
    %c0_i32_0 = arith.constant 0 : i32
    %c0_i32_1 = arith.constant 0 : i32
    return %c0_i32, %c0_i32_0 : i32, i32
  }
}

</mosaic_0001>

<bundles_post_ra>
// kernel: surface_model_forward.1
= control target key start
LH: loop header
LB: loop body
LE: loop exit
PB: predicated region body
PF: predicated region fallthrough
CT: control target
= control target key end

     0   :  { %s1020_s21 = smov 0   ;;  %s1144_s0 = inlined_call_operand.vmem [shape: f32[72,8], index: 0, kind: input, shape index: {}]   ;;  %s1145_s1 = inlined_call_operand.vmem [shape: f32[8,128], index: 1, kind: input, shape index: {}]   ;;  %s1146_s2 = inlined_call_operand.vmem [shape: f32[32,128], index: 2, kind: input, shape index: {}]   ;;  %s1147_s3 = inlined_call_operand.vmem [shape: f32[1,128], index: 3, kind: input, shape index: {}]   ;;  %s1148_s4 = inlined_call_operand.vmem [shape: f32[32,128], index: 4, kind: input, shape index: {}]   ;;  %s1149_s5 = inlined_call_operand.vmem [shape: f32[1,128], index: 5, kind: input, shape index: {}]   ;;  %s1150_s6 = inlined_call_operand.vmem [shape: f32[8,128], index: 6, kind: output, shape index: {}]  }
   0x1 LB: > { %s1026_s22 = sadd.s32 4294967295, %s975_s21   ;;  %p832_p0 = scmp.ge.s32.totalorder %s975_s21, 1  ;;  %s975_s21 = sphi %s1020_s21, %s16_s21  }
   0x2   : > { %p208_p1 = scmp.lt.s32.totalorder %s975_s21, 4 }
   0x4   : > { %p209_p2 = pnand %p832_p0, %p208_p1 }
   0x5   : > { %s1031_s23 = smul.u32 (!%p209_p2), 3, %s1026_s22  ;;  %p834_p4 = scmp.ne.s32.totalorder (!%p209_p2), %s1026_s22, 0 }
   0x6   : > { %212 = sbr.rel (%p209_p2) target bundleno = 2313 (0x909), region = 44 }
   0x7   : > { %p234_p3 = scmp.lt.s32.totalorder (!%p209_p2), %s1031_s23, 8 }
   0xb   : > { %s235_s24 = scalar_select %p234_p3, %s1031_s23, 8 }
   0xc   : > { %242 = sbr.rel (%p834_p4) target bundleno = 19 (0x13), region = 48 }
   0xd   : > { %s833_s25 = sshll.u32 %s235_s24, 3 }
   0xe   : > { %s1040_s28 = scalar_lea.vmem %s1144_s0, %s833_s25 }
  0x11   : > { %vm243_vm0 = vcmask 261120   ;;  %v977_v0 = vmov 0.0  }
  0x12   : > { %244 = vst.msk [vmem:[#allocation2] sm:$0xff] %vm243_vm0, %v977_v0  ;;  %245 = vst.msk [vmem:[#allocation3] sm:$0xff] %vm243_vm0, %v977_v0 }
  0x13 PF: > { %v250_v1 = vld [vmem:[%s1146_s2 + $0x18] sm:$0xff]  ;;  %v246_v2 = vld [vmem:[%s1145_s1] sm:$0xff]  ;;  %v978_v3 = vmov 0.0   ;;  %v249_v4 = vld [vmem:[%s1146_s2 + $0x10] sm:$0xff]  ;;  %vm261_vm1 = vcmask 64512   ;;  %vm979_vm2 = vmmov 0  }
  0x14   : > { %885 = vmatprep.subr.mxu1 %v978_v3  ;;  %874 = vmatprep.subr.mxu0 %v978_v3  ;;  %v252_v5 = vld [vmem:[%s1040_s28] sm:$0xff]  ;;  %v248_v6 = vld [vmem:[%s1146_s2 + $0x8] sm:$0xff]  ;;  %vm353_vm3 = vcmask 261120   ;;  %s980_s17 = smov 32   ;;  %s981_s24 = smov 64   ;;  %v254_v32 = vld [vmem:[%s1040_s28 + $0x10] sm:$0xff] }
  0x15   : > { %886 = vmatpush3.msra.mxu1 %v250_v1  ;;  %875 = vmatpush3.msra.mxu0 %v246_v2  ;;  %v247_v7 = vld [vmem:[%s1146_s2] sm:$0xff]  ;;  %s458_s18 = scalar_select %p234_p3, 1, 0  ;;  %v253_v30 = vld [vmem:[%s1040_s28 + $0x8] sm:$0xff] }
  0x16   : > { %887 = vmatprep.subr.mxu1 %v978_v3  ;;  %876 = vmatprep.mubr.msk.f32.mxu0 %vm979_vm2, %v978_v3  ;;  %v1085_v9 = vld [vmem:[%s1147_s3] ss:$0 sm:$0xff]  ;;  %s577_s25 = sadd.s32 1, %s1031_s23  ;;  %s690_s29 = sadd.s32 2, %s1031_s23 }
  0x17   : > { %888 = vmatpush3.msra.mxu1 %v249_v4  ;;  %877 = vmatmul.mubr.msk.f32.vlgmr.msra.gmra.mxu0 %vm261_vm1, %v252_v5  ;;  %s459_s19 = scvt.s32.f32 %s458_s18  ;;  %p578_p5 = scmp.lt.s32.totalorder %s577_s25, 8 }
  0x18   : > { %889 = vmatprep.subr.mxu1 %v978_v3  ;;  %893 = vmatprep.mubr.msk.f32.mxu1 %vm979_vm2, %v978_v3  ;;  %p691_p6 = scmp.lt.s32.totalorder %s690_s29, 8  ;;  %s982_s9 = smov 96  }
  0x19   : > { %890 = vmatpush3.msra.mxu1 %v248_v6  ;;  %v351_v8 = vld [vmem:[#allocation2] sm:$0xff]  ;;  %896 = vmatprep.subr.mxu0 %v978_v3  ;;  %v352_v17 = vld [vmem:[#allocation3] sm:$0xff]  ;;  %s462_s20 = ssub.f32 1.0, %s459_s19  ;;  %v460_v35 = vstv %s459_s19  ;;  %p845_p7 = scmp.ne.s32.totalorder %s1026_s22, 2 }
  0x1a   : > { %891 = vmatprep.subr.mxu1 %v978_v3  ;;  %897 = vmatpush3.msra.mxu0 %v250_v1  ;;  %s579_s26 = scalar_select %p578_p5, 1, 0 }
  0x1b   : > { %892 = vmatpush3.msra.mxu1 %v247_v7  ;;  %879 = vmatprep.mubr.msk.f32.mxu0 %vm979_vm2, %v978_v3  ;;  %v463_v24 = vstv %s462_s20  ;;  %s692_s30 = scalar_select %p691_p6, 1, 0 }
  0x1c   : > { %894 = vmatmul.mubr.msk.f32.vlgmr.msra.gmra.mxu1 %vm353_vm3, %v351_v8  ;;  %898 = vmatprep.subr.mxu0 %v978_v3  ;;  %v464_v25 = vmul.f32 %v463_v24, %v351_v8  ;;  %v471_v39 = vmul.f32 %v463_v24, %v352_v17  ;;  %s580_s27 = scvt.s32.f32 %s579_s26 }
  0x1d   : > { %899 = vmatpush3.msra.mxu0 %v249_v4  ;;  %907 = vmatprep.subr.mxu1 %v978_v3  ;;  %s693_s7 = scvt.s32.f32 %s692_s30 }
  0x1e   : > { %900 = vmatprep.subr.mxu0 %v978_v3  ;;  %908 = vmatpush3.msra.mxu1 %v250_v1  ;;  %s583_s28 = ssub.f32 1.0, %s580_s27  ;;  %v581_v2 = vstv %s580_s27 }
  0x1f   : > { %901 = vmatpush3.msra.mxu0 %v248_v6  ;;  %909 = vmatprep.subr.mxu1 %v978_v3  ;;  %s696_s8 = ssub.f32 1.0, %s693_s7  ;;  %v694_v24 = vstv %s693_s7 }
  0x20   : > { %902 = vmatprep.subr.mxu0 %v978_v3  ;;  %910 = vmatpush3.msra.mxu1 %v249_v4  ;;  %v584_v63 = vstv %s583_s28 }
  0x21   : > { %903 = vmatpush3.msra.mxu0 %v247_v7  ;;  %911 = vmatprep.subr.mxu1 %v978_v3 }
  0x22   : > { %912 = vmatpush3.msra.mxu1 %v248_v6  ;;  %915 = vmatprep.mubr.msk.f32.mxu1 %vm979_vm2, %v978_v3 }
  0x23   : > { %913 = vmatprep.subr.mxu1 %v978_v3  ;;  %880 = vmatmul.mubr.msk.f32.gmra.mxu0 %vm261_vm1, %v253_v30 }
  0x24   : > { %914 = vmatpush3.msra.mxu1 %v247_v7  ;;  %882 = vmatprep.mubr.msk.f32.mxu0 %vm979_vm2, %v978_v3 }
  0x27   : > { %883 = vmatmul.mubr.msk.f32.gmra.mxu0 %vm261_vm1, %v254_v32 }
  0x28   : > { %904 = vmatprep.mubr.msk.f32.mxu0 %vm979_vm2, %v978_v3 }
  0xd7   : > { %v337_v10 = vpop.f32.mrf.mxu0 }
  0xd8   : > { %v338_v11 = vadd.f32 %v1085_v9, %v337_v10 }
  0xd9   : > { %v878_v12 = vpop.f32.mrf.mxu0 }
  0xdc   : > { %v423_v13 = vpop.f32.mrf.mxu1 }
  0xdd   : > { %v427_v14 = vadd.f32 %v423_v13, %v338_v11 }
  0xde   : > { %v895_v15 = vpop.f32.mrf.mxu1 }
  0xdf   : > { %945 = vtanh.f32 %v427_v14  ;;  %v840_v18 = vmul.f32 -1.442695, %v427_v14 }
  0xe1   : > { %947 = vpow2.f32 %v840_v18 }
  0xe3   : > { %v342_v40 = vpop.f32.mrf.mxu0 }
  0xe4   : > { %v343_v45 = vadd.f32 %v1085_v9, %v342_v40 }
  0xe5   : > { %v881_v41 = vpop.f32.mrf.mxu0 }
  0xe7   : > { %v347_v42 = vpop.f32.mrf.mxu0 }
  0xe8   : > { %v348_v7 = vadd.f32 %v1085_v9, %v347_v42 }
  0xe9   : > { %v884_v43 = vpop.f32.mrf.mxu0 }
  0xec   : > { %v946_v16 = vpop.eup %945 }
  0xed   : > { %441 = vrot.lane.b32.xlu0 %v946_v16, %s980_s17 }
  0xee   : > { %v948_v19 = vpop.eup %947 }
  0xef   : > { %v431_v20 = vadd.f32 1.0, %v948_v19 }
  0xf1   : > { %436 = vrot.lane.b32.xlu0 %v352_v17, %s980_s17  ;;  %949 = vrcp.f32 %v431_v20 }
  0xf5   : > { %466 = vrot.lane.b32.xlu0 %v464_v25, %s981_s24  ;;  %v697_v25 = vstv %s696_s8 }
  0xfe   : > { %v950_v21 = vpop.eup %949 }
 0x15f   : > { %v442_v22 = vpop.permute.xlu0 %441 }
 0x160   : > { %v444_v23 = vmul.f32 %v950_v21, %v442_v22 }
 0x162   : > { %446 = vrot.lane.b32.xlu1 %v444_v23, %s980_s17 }
 0x163   : > { %v437_v26 = vpop.permute.xlu0 %436 }
 0x164   : > { %v439_v27 = vmul.f32 %v950_v21, %v437_v26 }
 0x167   : > { %v467_v36 = vpop.permute.xlu0 %466 }
 0x1d4   : > { %v447_v28 = vpop.permute.xlu1 %446 }
 0x1d5   : > { %v449_v29 = vadd.f32 %v447_v28, %v439_v27 }
 0x1d7   : > { %951 = vtanh.f32 %v449_v29  ;;  %v470_v57 = vmul.f32 %v460_v35, %v449_v29 }
 0x1e4   : > { %v952_v31 = vpop.eup %951 }
 0x1e5   : > { %452 = vrot.lane.b32.xlu1 %v952_v31, %s980_s17 }
 0x257   : > { %v453_v33 = vpop.permute.xlu1 %452 }
 0x258   : > { %v455_v34 = vmul.f32 %v950_v21, %v453_v33 }
 0x25a   : > { %v461_v37 = vmul.f32 %v460_v35, %v455_v34 }
 0x25c   : > { %v469_v38 = vadd.f32 %v467_v36, %v461_v37 }
 0x25e   : > { %478 = vrot.lane.b32.xlu1 %v469_v38, %s981_s24  ;;  %v585_v3 = vmul.f32 %v584_v63, %v469_v38 }
 0x262   : > { %473 = vrot.lane.b32.xlu1 %v471_v39, %s980_s17 }
 0x2d0   : > { %v479_v44 = vpop.permute.xlu1 %478 }
 0x2d1   : > { %905 = vmatmul.mubr.msk.f32.vlgmr.msra.gmra.mxu0 %vm353_vm3, %v479_v44 }
 0x2d4   : > { %v474_v56 = vpop.permute.xlu1 %473 }
 0x2d5   : > { %v476_v58 = vadd.f32 %v474_v56, %v470_v57 }
 0x2d7   : > { %v588_v9 = vmul.f32 %v584_v63, %v476_v58 }
 0x391   : > { %v548_v46 = vpop.f32.mrf.mxu0 }
 0x392   : > { %v552_v47 = vadd.f32 %v548_v46, %v343_v45 }
 0x393   : > { %v906_v48 = vpop.f32.mrf.mxu0 }
 0x394   : > { %953 = vtanh.f32 %v552_v47  ;;  %v842_v50 = vmul.f32 -1.442695, %v552_v47 }
 0x396   : > { %955 = vpow2.f32 %v842_v50 }
 0x3a1   : > { %v954_v49 = vpop.eup %953 }
 0x3a2   : > { %562 = vrot.lane.b32.xlu0 %v954_v49, %s980_s17 }
 0x3a3   : > { %v956_v51 = vpop.eup %955 }
 0x3a4   : > { %v556_v52 = vadd.f32 1.0, %v956_v51 }
 0x3a6   : > { %957 = vrcp.f32 %v556_v52 }
 0x3b3   : > { %v958_v53 = vpop.eup %957 }
 0x3b4   : > { %v560_v59 = vmul.f32 %v958_v53, %v476_v58 }
 0x414   : > { %v563_v54 = vpop.permute.xlu0 %562 }
 0x415   : > { %v565_v55 = vmul.f32 %v958_v53, %v563_v54 }
 0x417   : > { %567 = vrot.lane.b32.xlu0 %v565_v55, %s980_s17 }
 0x489   : > { %v568_v60 = vpop.permute.xlu0 %567 }
 0x48a   : > { %v570_v61 = vadd.f32 %v568_v60, %v560_v59 }
 0x48c   : > { %959 = vtanh.f32 %v570_v61  ;;  %v587_v19 = vmul.f32 %v581_v2, %v570_v61 }
 0x48e   : > { %v589_v20 = vadd.f32 %v588_v9, %v587_v19 }
 0x490   : > { %v701_v28 = vmul.f32 %v697_v25, %v589_v20 }
 0x499   : > { %v960_v62 = vpop.eup %959 }
 0x49a   : > { %573 = vrot.lane.b32.xlu1 %v960_v62, %s980_s17 }
 0x50c   : > { %v574_v0 = vpop.permute.xlu1 %573 }
 0x50d   : > { %v576_v1 = vmul.f32 %v958_v53, %v574_v0 }
 0x50f   : > { %v582_v4 = vmul.f32 %v581_v2, %v576_v1 }
 0x511   : > { %v586_v5 = vadd.f32 %v585_v3, %v582_v4 }
 0x513   : > { %591 = vrot.lane.b32.xlu0 %v586_v5, %s981_s24  ;;  %v698_v33 = vmul.f32 %v697_v25, %v586_v5 }
 0x585   : > { %v592_v6 = vpop.permute.xlu0 %591 }
 0x586   : > { %916 = vmatmul.mubr.msk.f32.vlgmr.msra.gmra.mxu1 %vm353_vm3, %v592_v6 }
 0x646   : > { %v661_v8 = vpop.f32.mrf.mxu1 }
 0x647   : > { %v665_v10 = vadd.f32 %v661_v8, %v348_v7 }
 0x648   : > { %v917_v11 = vpop.f32.mrf.mxu1 }
 0x649   : > { %961 = vtanh.f32 %v665_v10  ;;  %v844_v13 = vmul.f32 -1.442695, %v665_v10 }
 0x64b   : > { %963 = vpow2.f32 %v844_v13 }
 0x656   : > { %v962_v12 = vpop.eup %961 }
 0x657   : > { %675 = vrot.lane.b32.xlu1 %v962_v12, %s980_s17 }
 0x658   : > { %v964_v14 = vpop.eup %963 }
 0x659   : > { %v669_v15 = vadd.f32 1.0, %v964_v14 }
 0x65b   : > { %965 = vrcp.f32 %v669_v15 }
 0x668   : > { %v966_v16 = vpop.eup %965 }
 0x669   : > { %v673_v21 = vmul.f32 %v966_v16, %v589_v20 }
 0x6c9   : > { %v676_v17 = vpop.permute.xlu1 %675 }
 0x6ca   : > { %v678_v18 = vmul.f32 %v966_v16, %v676_v17 }
 0x6cc   : > { %680 = vrot.lane.b32.xlu0 %v678_v18, %s980_s17 }
 0x73e   : > { %v681_v22 = vpop.permute.xlu0 %680 }
 0x73f   : > { %v683_v23 = vadd.f32 %v681_v22, %v673_v21 }
 0x741   : > { %967 = vtanh.f32 %v683_v23  ;;  %v700_v26 = vmul.f32 %v694_v24, %v683_v23 }
 0x743   : > { %v702_v29 = vadd.f32 %v701_v28, %v700_v26 }
 0x74e   : > { %v968_v27 = vpop.eup %967 }
 0x74f   : > { %686 = vrot.lane.b32.xlu1 %v968_v27, %s980_s17 }
 0x753   : > { %709 = vrot.lane.b32.xlu1 %v702_v29, %s982_s9 }
 0x7c1   : > { %v687_v30 = vpop.permute.xlu1 %686 }
 0x7c2   : > { %v689_v31 = vmul.f32 %v966_v16, %v687_v30 }
 0x7c4   : > { %v695_v32 = vmul.f32 %v694_v24, %v689_v31 }
 0x7c5   : > { %v710_v34 = vpop.permute.xlu1 %709 }
 0x7c6   : > { %712 = vst.msk [vmem:[#allocation3] sm:$0xff] %vm353_vm3, %v710_v34  ;;  %v699_v35 = vadd.f32 %v698_v33, %v695_v32 }
 0x7c8   : > { %704 = vrot.lane.b32.xlu0 %v699_v35, %s981_s24 }
 0x837   : > { %716 = sbr.rel (%p845_p7) target bundleno = 2313 (0x909), region = 52 }
 0x83a   : > { %v705_v36 = vpop.permute.xlu0 %704 }
 0x83b   : > { %707 = vst.msk [vmem:[#allocation2] sm:$0xff] %vm353_vm3, %v705_v36 }
 0x83c   : > { %v720_v37 = vld [vmem:[%s1148_s4 + $0x18] sm:$0xff]  ;;  %v983_v38 = vmov 0.0   ;;  %v719_v39 = vld [vmem:[%s1148_s4 + $0x10] sm:$0xff]  ;;  %vm984_vm4 = vmmov 0   ;;  %v718_v40 = vld [vmem:[%s1148_s4 + $0x8] sm:$0xff] }
 0x83d   : > { %918 = vmatprep.subr.mxu0 %v983_v38  ;;  %926 = vmatprep.mubr.msk.f32.mxu0 %vm984_vm4, %v983_v38  ;;  %v717_v41 = vld [vmem:[%s1148_s4] sm:$0xff] }
 0x83e   : > { %919 = vmatpush3.msra.mxu0 %v720_v37  ;;  %v846_v42 = vld [vmem:[%s1149_s5] ss:$0 sm:$0xff] }
 0x83f   : > { %920 = vmatprep.subr.mxu0 %v983_v38 }
 0x840   : > { %921 = vmatpush3.msra.mxu0 %v719_v39 }
 0x841   : > { %922 = vmatprep.subr.mxu0 %v983_v38 }
 0x842   : > { %923 = vmatpush3.msra.mxu0 %v718_v40 }
 0x843   : > { %924 = vmatprep.subr.mxu0 %v983_v38 }
 0x844   : > { %925 = vmatpush3.msra.mxu0 %v717_v41 }
 0x845   : > { %927 = vmatmul.mubr.msk.f32.vlgmr.msra.gmra.mxu0 %vm353_vm3, %v705_v36 }
 0x905   : > { %v796_v43 = vpop.f32.mrf.mxu0 }
 0x906   : > { %v797_v44 = vadd.f32 %v846_v42, %v796_v43 }
 0x907   : > { %v928_v45 = vpop.f32.mrf.mxu0 }
 0x908   : > { %800 = vst [vmem:[%s1150_s6] sm:$0xff] %v797_v44 }
 0x909 PF: > { %s16_s21 = sadd.s32 1, %s975_s21  }
 0x90a   : > { %p13_p8 = scmp.ge.s32.totalorder %s16_s21, 5  }
 0x90c   :  { %15 = sbr.rel (!%p13_p8) target bundleno = 1 (0x1), region = 78 }

</bundles_post_ra>
